<compile_context>
chip_gen: v7x
topology: tpu7x:2x2x1
jax: 0.10.0
libtpu: 0.0.40
codegen_flags: <defaults>
</compile_context>

<pallas_src>
import jax
import jax.numpy as jnp
from jax.experimental import pallas as pl
from jax.experimental.pallas import tpu as pltpu


# ---------------------------------------------------------------------------
# Pallas kernel: one (tm, tn) tile of the product-RBF kernel matrix.
# The whole exponent comes out of a single MXU matmul of augmented features.
# ---------------------------------------------------------------------------
def _gwi_tile_kernel(a_ref, bt_ref, o_ref):
    # a_ref : (tm, D+3) f32   rows = [x/ls_x, t/ls_t, -0.5*||a||^2, 1]
    # bt_ref: (D+3, tn) f32   cols = [x'/ls_x, t'/ls_t, 1, -0.5*||b||^2]^T
    # cross[i, j] = a_i.b_j - 0.5*||a_i||^2 - 0.5*||b_j||^2
    #             = -0.5 * ||a_i - b_j||^2           (the full exponent)
    cross = jnp.dot(a_ref[...], bt_ref[...], preferred_element_type=jnp.float32)
    # min(., 0) plays the role of gpytorch's clamp(dist^2, min=0).
    o_ref[...] = jnp.exp(jnp.minimum(cross, 0.0)).astype(o_ref.dtype)


# ---------------------------------------------------------------------------
# Tile selection: grid-count-driven sizes (minimal padding), even total tile
# count along the parallel axes so a v7x megacore shards evenly.
# ---------------------------------------------------------------------------
def _round_up(v, m):
    return ((v + m - 1) // m) * m


def _pick_tiles(n, m, tm_max=512, tn_max=2048):
    gm = pl.cdiv(n, tm_max)
    tm = _round_up(pl.cdiv(n, gm), 8)       # sublane axis: multiple of 8
    gm = pl.cdiv(n, tm)

    gn = pl.cdiv(m, tn_max)
    tn = _round_up(pl.cdiv(m, gn), 128)     # lane axis: multiple of 128
    gn = pl.cdiv(m, tn)

    # v7x megacore: prefer an even total tile count over the parallel axes.
    if (gm * gn) % 2 == 1:
        if n > 8 * gm:                      # rows still splittable (8-granular)
            gm += 1
            tm = _round_up(pl.cdiv(n, gm), 8)
            gm = pl.cdiv(n, tm)
        elif m > 128 * gn:                  # else split columns (128-granular)
            gn += 1
            tn = _round_up(pl.cdiv(m, gn), 128)
            gn = pl.cdiv(m, tn)
    return tm, tn, gm, gn


# ---------------------------------------------------------------------------
# Wrapper (glue): split x / t, fold lengthscales and row norms into augmented
# features, pad to tile multiples, launch pallas_call.
# ---------------------------------------------------------------------------
def gwi_survival_kernel(x1, x2=None, *, ls_x, ls_t, tm_max=512, tn_max=2048,
                        out_dtype=jnp.float32):
    if x2 is None:
        x2 = x1
    x1 = x1.astype(jnp.float32)
    x2 = x2.astype(jnp.float32)

    inv_lx = 1.0 / ls_x
    inv_lt = 1.0 / ls_t

    # unsqueezeXT (2-D path) + fold lengthscales into the features:
    #   K[i,j] = exp(-0.5 * || [x_i/ls_x, t_i/ls_t] - [x'_j/ls_x, t'_j/ls_t] ||^2)
    a = jnp.concatenate([x1[:, :-1] * inv_lx, x1[:, -1:] * inv_lt], axis=1)
    b = jnp.concatenate([x2[:, :-1] * inv_lx, x2[:, -1:] * inv_lt], axis=1)
    n = a.shape[0]
    m = b.shape[0]

    # Fold the row norms into the contraction (exponent from one matmul).
    a_sq = jnp.sum(a * a, axis=-1, keepdims=True)                    # (n, 1)
    b_sq = jnp.sum(b * b, axis=-1, keepdims=True)                    # (m, 1)
    a_aug = jnp.concatenate(
        [a, -0.5 * a_sq, jnp.ones((n, 1), jnp.float32)], axis=1)     # (n, d+3)
    bt_aug = jnp.concatenate(
        [b, jnp.ones((m, 1), jnp.float32), -0.5 * b_sq], axis=1).T   # (d+3, m)
    d_aug = a_aug.shape[1]

    tm, tn, gm, gn = _pick_tiles(n, m, tm_max, tn_max)
    n_pad, m_pad = gm * tm, gn * tn

    # Zero padding is harmless: padded rows/cols give exponent 0 -> value 1,
    # and are sliced away before returning.
    a_p = jnp.pad(a_aug, ((0, n_pad - n), (0, 0)))                   # (n_pad, d+3)
    bt_p = jnp.pad(bt_aug, ((0, 0), (0, m_pad - m)))                 # (d+3, m_pad)

    out = pl.pallas_call(
        _gwi_tile_kernel,
        out_shape=jax.ShapeDtypeStruct((n_pad, m_pad), out_dtype),
        grid_spec=pltpu.PrefetchScalarGridSpec(
            num_scalar_prefetch=0,
            grid=(gm, gn),
            in_specs=[
                pl.BlockSpec((tm, d_aug), lambda i, j: (i, 0)),   # A (augmented)
                pl.BlockSpec((d_aug, tn), lambda i, j: (0, j)),   # B^T (augmented)
            ],
            out_specs=pl.BlockSpec((tm, tn), lambda i, j: (i, j)),
        ),
        compiler_params=pltpu.CompilerParams(
            dimension_semantics=("parallel", "parallel"),
            vmem_limit_bytes=48 * 1024 * 1024),
    )(a_p, bt_p)

    return out[:n, :m]


# ---------------------------------------------------------------------------
# Median-heuristic lengthscale (Kernel.get_median_ls analogue):
#   sqrt(median(pairwise euclidean distances)).  Plain-JAX glue (init only).
# ---------------------------------------------------------------------------
def median_lengthscale(a, b):
    d2 = jnp.sum((a[:, None, :] - b[None, :, :]) ** 2, axis=-1)
    d = jnp.sqrt(jnp.maximum(d2, 0.0))
    ls = jnp.sqrt(jnp.median(d))
    # Guard against degenerate (duplicate-heavy) data producing ls == 0.
    return jnp.maximum(ls, 1e-6)


def _reference_forward(x1, x2, ls_x, ls_t):
    x, t = x1[:, :-1], x1[:, -1:]
    x_, t_ = x2[:, :-1], x2[:, -1:]
    dx = jnp.sum((x[:, None, :] - x_[None, :, :]) ** 2, axis=-1)
    dt = (t - t_.T) ** 2
    return jnp.exp(-0.5 * dx / (ls_x * ls_x)) * jnp.exp(-0.5 * dt / (ls_t * ls_t))


if __name__ == "__main__":
    key = jax.random.PRNGKey(0)
    k_x, k_t = jax.random.split(key)

    n, d = 256, 8                                    # N samples, D covariates
    X = jax.random.normal(k_x, (n, d), dtype=jnp.float32)
    T = jax.random.uniform(k_t, (n, 1), dtype=jnp.float32) * 5.0
    x1 = jnp.concatenate([X, T], axis=1)             # [N, D+1]

    # __init__: median-heuristic lengthscales from X and T.
    ls_x = median_lengthscale(X, X)
    ls_t = median_lengthscale(T, T)

    K_ref = _reference_forward(x1, x1, ls_x, ls_t)

    # forward(x1) with x2=None -> [N, N] kernel matrix.
    K = gwi_survival_kernel(x1, None, ls_x=ls_x, ls_t=ls_t)
    K = jax.block_until_ready(K)
    assert K.shape == (n, n)
    assert jnp.allclose(K, K_ref, rtol=1e-4, atol=2e-4)

    # Explicit-x2 path with a rectangular output.
    x2 = x1[:100]
    K2 = jax.block_until_ready(
        gwi_survival_kernel(x1, x2, ls_x=ls_x, ls_t=ls_t))
    assert K2.shape == (n, 100)
    assert jnp.allclose(K2, K_ref[:, :100], rtol=1e-4, atol=2e-4)

    # bf16-output path (halved HBM writeback); looser tolerance by design.
    K_bf16 = jax.block_until_ready(
        gwi_survival_kernel(x1, None, ls_x=ls_x, ls_t=ls_t,
                            out_dtype=jnp.bfloat16))
    assert K_bf16.shape == (n, n)
    assert jnp.allclose(K_bf16.astype(jnp.float32), K_ref, rtol=2e-2, atol=1e-2)

    print("KERNEL_OK")
</pallas_src>

<mosaic_0001>
module attributes {stable_mosaic.version = 11 : i64} {
  func.func @_gwi_tile_kernel(%arg0: i32, %arg1: i32, %arg2: memref<128x11xf32, #tpu.memory_space<vmem>>, %arg3: memref<11x256xf32, #tpu.memory_space<vmem>>, %arg4: memref<128x256xf32, #tpu.memory_space<vmem>>) attributes {dimension_semantics = [#tpu.dimension_semantics<parallel>, #tpu.dimension_semantics<parallel>], iteration_bounds = array<i64: 2, 1>, scalar_prefetch = 0 : i64, scratch_operands = 0 : i64, tpu.core_type = #tpu.core_type<tc>, window_params = [{transform_indices = @transform_0, window_bounds = array<i64: 128, 11>}, {transform_indices = @transform_1, window_bounds = array<i64: 11, 256>}, {transform_indices = @transform_2, window_bounds = array<i64: 128, 256>}]} {
    %c0 = arith.constant 0 : index
    %c0_0 = arith.constant 0 : index
    %0 = vector.load %arg2[%c0, %c0_0] : memref<128x11xf32, #tpu.memory_space<vmem>>, vector<128x11xf32>
    %c0_1 = arith.constant 0 : index
    %c0_2 = arith.constant 0 : index
    %1 = vector.load %arg3[%c0_1, %c0_2] : memref<11x256xf32, #tpu.memory_space<vmem>>, vector<11x256xf32>
    %cst = arith.constant dense<0.000000e+00> : vector<128x256xf32>
    %2 = tpu.matmul %0, %1, %cst {dimension_numbers = #tpu.dot_dimension_numbers<[1], [0], [0], [1], [0, 0, 1, 1], [], []>} : vector<128x11xf32>, vector<11x256xf32>, vector<128x256xf32> -> vector<128x256xf32>
    %cst_3 = arith.constant 0.000000e+00 : f32
    %3 = vector.broadcast %cst_3 : f32 to vector<128x256xf32>
    %4 = arith.minimumf %2, %3 : vector<128x256xf32>
    %5 = math.exp %4 : vector<128x256xf32>
    %c0_4 = arith.constant 0 : index
    %c0_5 = arith.constant 0 : index
    %6 = vector.load %arg4[%c0_4, %c0_5] : memref<128x256xf32, #tpu.memory_space<vmem>>, vector<128x256xf32>
    tpu.vector_store %arg4[%c0_4, %c0_5], %5 {strides = array<i32>} : memref<128x256xf32, #tpu.memory_space<vmem>>, vector<128x256xf32>,
    return
  }
  func.func @transform_0(%arg0: i32, %arg1: i32) -> (i32, i32) {
    %c0_i32 = arith.constant 0 : i32
    %c0_i32_0 = arith.constant 0 : i32
    return %arg0, %c0_i32 : i32, i32
  }
  func.func @transform_1(%arg0: i32, %arg1: i32) -> (i32, i32) {
    %c0_i32 = arith.constant 0 : i32
    %c0_i32_0 = arith.constant 0 : i32
    return %c0_i32, %arg1 : i32, i32
  }
  func.func @transform_2(%arg0: i32, %arg1: i32) -> (i32, i32) {
    %c0_i32 = arith.constant 0 : i32
    return %arg0, %arg1 : i32, i32
  }
}

</mosaic_0001>

<bundles_post_ra>
// kernel: tpu_custom_call.1
= control target key start
LH: loop header
LB: loop body
LE: loop exit
PB: predicated region body
PF: predicated region fallthrough
CT: control target
= control target key end

     0   :  { %7 = vsyncpa [#allocation3], 0  ;;  %s1117_s0 = inlined_call_operand.vmem [shape: f32[256,11], index: 0, kind: input, shape index: {}]   ;;  %s1118_s1 = inlined_call_operand.vmem [shape: f32[11,256], index: 1, kind: input, shape index: {}]   ;;  %s1119_s2 = inlined_call_operand.hbm [shape: f32[256,256], index: 2, kind: output, shape index: {}]  }
   0x1   :  { %9 = vsyncpa [#allocation3 + $0x1], 0  ;;  %s918_s9 = smov 0   ;;  %s920_s10 = smov 0  }
   0x2   :  { %s922_s11 = smov 0   ;;  %s924_s12 = smov 0  }
   0x3   :  { %s926_s13 = smov 0   ;;  %s928_s14 = smov 0  }
   0x4 LB: > { %s652_s15 = sadd.s32 4294967295, %s896_s14   ;;  %s653_s16 = sadd.s32 4294967294, %s896_s14   ;;  %s896_s14 = sphi %s928_s14, %s15_s14   ;;  %s892_s13 = sphi %s926_s13, %s1126_s13   ;;  %s888_s12 = sphi %s924_s12, %s1125_s12   ;;  %s884_s11 = sphi %s922_s11, %s1124_s11   ;;  %s880_s10 = sphi %s920_s10, %s1123_s10   ;;  %s876_s9 = sphi %s918_s9, %s1122_s9  }
   0x5   : > { %s27_s17 = sadd.s32 1, %s892_s13  ;;  %s88_s18 = sadd.s32 1, %s884_s11 }
   0x6   : > { %p29_p0 = scmp.ge.s32.totalorder %s27_s17, 2  ;;  %p98_p1 = scmp.ne.s32.totalorder %s884_s11, %s880_s10 }
   0x7   : > { %p99_p2 = scmp.eq.s32.totalorder %s652_s15, 1  ;;  %p104_p3 = scmp.ne.s32.totalorder %s880_s10, %s876_s9 }
   0x8   : > { %s1128_s17 = smov (%p29_p0, %s27_s17), 0  ;;  %p105_p5 = scmp.eq.s32.totalorder %s653_s16, 1 }
   0x9   : > { %p958_p4 = por %p99_p2, %p98_p1  ;;  %s83_s20 = ssub.s32 %s892_s13, %s1128_s17 }
   0xa   : > { %p657_p6 = scmp.ge.s32.totalorder %s896_s14, 1  ;;  %p86_p7 = scmp.eq.s32.totalorder %s83_s20, 0 }
   0xb   : > { %p965_p8 = por %p105_p5, %p104_p3  ;;  %p141_p9 = scmp.lt.s32.totalorder %s896_s14, 3 }
   0xc   : > { %s971_s22 = scalar_select %p86_p7, %s884_s11, %s88_s18  }
   0xd   : > { %p142_p10 = pnand %p657_p6, %p141_p9 }
   0xe   : > { %v199_v0 = vld [vmem:[%s1118_s1 + $0x8] sm:$0xff] (!%p142_p10)  ;;  %v201_v1 = vld [vmem:[%s1118_s1 + $0x18] sm:$0x7] (!%p142_p10)  ;;  %vm251_vm0 = vcmask (!%p142_p10), 1042432   ;;  %v198_v2 = vld [vmem:[%s1118_s1] sm:$0xff] (!%p142_p10)  ;;  %vm898_vm1 = vmmov (!%p142_p10), 1  }
   0xf   : > { %145 = sbr.rel (%p142_p10) target bundleno = 301 (0x12d), region = 28  ;;  %v687_v3 = vpack.c.bf16 (!%p142_p10), %v201_v1, %v199_v0  ;;  %vm688_vm2 = vmpackc.low (!%p142_p10), %vm251_vm0, %vm898_vm1  ;;  %v200_v4 = vld [vmem:[%s1118_s1 + $0x10] sm:$0x7] (!%p142_p10)  ;;  %s659_s3 = sshll.u32 (!%p142_p10), %s888_s12, 4  ;;  %v899_v6 = vmov (!%p142_p10), 0.0   ;;  %vm202_vm3 = vcmask (!%p142_p10), 89088  }
  0x10   : > { %v690_v5 = vpack.c.bf16 (!%p142_p10), %v200_v4, %v198_v2  ;;  %322 = vmatprep.mubr.f32.mxu0 (!%p142_p10), %v899_v6  ;;  %370 = vmatprep.mubr.f32.mxu1 (!%p142_p10), %v899_v6  ;;  %p169_p11 = scmp.lt.s32.totalorder (!%p142_p10), %s659_s3, 31  ;;  %s165_s8 = sand.u32 (!%p142_p10), 1, %s880_s10  }
  0x11   : > { %689 = vmatprep.subr.msk.bf16.mxu0 (!%p142_p10), %vm688_vm2, %v687_v3  ;;  %693 = vmatprep.subr.msk.bf16.mxu1 (!%p142_p10), %vm688_vm2, %v687_v3  ;;  %s658_s15 = sshll.u32 (!%p142_p10), %s165_s8, 8  ;;  %s686_s18 = sshll.u32 (!%p142_p10), %s888_s12, 12 }
  0x12   : > { %692 = vmatpush1.bf16.msk.msra.mxu0 (!%p142_p10), %vm688_vm2, %v690_v5  ;;  %694 = vmatpush1.bf16.msk.msra.mxu1 (!%p142_p10), %vm688_vm2, %v690_v5  ;;  %s1026_s16 = scalar_lea.vmem (!%p142_p10), [#allocation2], %s658_s15  ;;  %s1062_s25 = scalar_lea.hbm (!%p142_p10), %s1119_s2, %s686_s18 }
  0x13   : > { %s564_s20 = sshll.u32 (!%p142_p10), %s1026_s16, 4  ;;  %s1071_s12 = scalar_lea.sflag (!%p142_p10), [#allocation3], %s165_s8  ;;  %s1064_s20 = int_to_ptr.vmem [resolvable:$true] %s564_s20 }
  0x14   : > { %s818_s26 = scalar_lea.vmem (!%p142_p10), %s1064_s20, 4096  ;;  %s900_s27 = smov (!%p142_p10), [#allocation2]  }
  0x15   : > { %p819_p12 = scmp.ne.s32.totalorder (!%p142_p10), %s1064_s20, %s818_s26  ;;  %s822_s28 = sshll.u32 (!%p142_p10), %s900_s27, 4  ;;  %s823_s28 = int_to_ptr.vmem [resolvable:$false] %s822_s28 }
  0x16   : > { %s1130_s3 = smov (!%p169_p11, %s659_s3), 31  ;;  %s824_s29 = scalar_lea.vmem %s823_s28, 8192 }
  0x17   : > { %s660_s4 = sshll.u32 %s1130_s3, 3  ;;  %p820_p13 = pnand %p819_p12, %p958_p4 }
  0x18   : > { %s989_s7 = scalar_lea.vmem %s1117_s0, %s660_s4  ;;  %p825_p1 = scmp.lt.s32.totalorder %s1064_s20, %s823_s28 }
  0x19   : > { %v182_v7 = vld [vmem:[%s989_s7] sm:$0xff]  ;;  %v183_v9 = vld [vmem:[%s989_s7 + $0x8] sm:$0xff]  ;;  %v184_v11 = vld [vmem:[%s989_s7 + $0x10] sm:$0xff]  ;;  %p821_p0 = pneg %p820_p13  ;;  %p826_p2 = scmp.lt.s32.totalorder %s824_s29, %s818_s26 }
  0x1a   : > { %v190_v8 = vld [vmem:[%s989_s7 + $0x40] sm:$0xff]  ;;  %663 = vmatmul.mubr.msk.f32.vlgmr.msra.gmra.mrb[0].mxu0 %vm202_vm3, %v182_v7  ;;  %v191_v10 = vld [vmem:[%s989_s7 + $0x48] sm:$0xff]  ;;  %v192_v12 = vld [vmem:[%s989_s7 + $0x50] sm:$0xff] }
  0x1b   : > { %671 = vmatmul.mubr.msk.f32.vlgmr.msra.gmra.mrb[0].mxu1 %vm202_vm3, %v190_v8  ;;  %328 = vmatprep.mubr.f32.mxu0 %v899_v6  ;;  %v185_v13 = vld [vmem:[%s989_s7 + $0x18] sm:$0xff]  ;;  %v186_v15 = vld [vmem:[%s989_s7 + $0x20] sm:$0xff]  ;;  %v187_v17 = vld [vmem:[%s989_s7 + $0x28] sm:$0xff]  ;;  %p827_p3 = por %p826_p2, %p825_p1 }
  0x1c   : > { %376 = vmatprep.mubr.f32.mxu1 %v899_v6  ;;  %v193_v14 = vld [vmem:[%s989_s7 + $0x58] sm:$0xff]  ;;  %v194_v16 = vld [vmem:[%s989_s7 + $0x60] sm:$0xff]  ;;  %v195_v18 = vld [vmem:[%s989_s7 + $0x68] sm:$0xff] }
  0x1d   : > { %v188_v19 = vld [vmem:[%s989_s7 + $0x30] sm:$0xff]  ;;  %v189_v21 = vld [vmem:[%s989_s7 + $0x38] sm:$0xff]  ;;  %p828_p5 = pnand %p827_p3, %p821_p0 }
  0x1e   : > { %664 = vmatmul.mubr.msk.f32.gmra.mrb[2].mxu0 %vm202_vm3, %v183_v9  ;;  %v196_v20 = vld [vmem:[%s989_s7 + $0x70] sm:$0xff]  ;;  %v197_v22 = vld [vmem:[%s989_s7 + $0x78] sm:$0xff] }
  0x1f   : > { %672 = vmatmul.mubr.msk.f32.gmra.mrb[2].mxu1 %vm202_vm3, %v191_v10  ;;  %334 = vmatprep.mubr.f32.mxu0 %v899_v6 }
  0x20   : > { %382 = vmatprep.mubr.f32.mxu1 %v899_v6 }
  0x22   : > { %665 = vmatmul.mubr.msk.f32.gmra.mrb[4].mxu0 %vm202_vm3, %v184_v11 }
  0x23   : > { %673 = vmatmul.mubr.msk.f32.gmra.mrb[4].mxu1 %vm202_vm3, %v192_v12  ;;  %340 = vmatprep.mubr.f32.mxu0 %v899_v6 }
  0x24   : > { %388 = vmatprep.mubr.f32.mxu1 %v899_v6 }
  0x26   : > { %666 = vmatmul.mubr.msk.f32.gmra.mrb[6].mxu0 %vm202_vm3, %v185_v13 }
  0x27   : > { %674 = vmatmul.mubr.msk.f32.gmra.mrb[6].mxu1 %vm202_vm3, %v193_v14  ;;  %346 = vmatprep.mubr.f32.mxu0 %v899_v6 }
  0x28   : > { %394 = vmatprep.mubr.f32.mxu1 %v899_v6 }
  0x2a   : > { %667 = vmatmul.mubr.msk.f32.gmra.mrb[8].mxu0 %vm202_vm3, %v186_v15 }
  0x2b   : > { %675 = vmatmul.mubr.msk.f32.gmra.mrb[8].mxu1 %vm202_vm3, %v194_v16  ;;  %352 = vmatprep.mubr.f32.mxu0 %v899_v6 }
  0x2c   : > { %400 = vmatprep.mubr.f32.mxu1 %v899_v6 }
  0x2e   : > { %668 = vmatmul.mubr.msk.f32.gmra.mrb[10].mxu0 %vm202_vm3, %v187_v17 }
  0x2f   : > { %676 = vmatmul.mubr.msk.f32.gmra.mrb[10].mxu1 %vm202_vm3, %v195_v18  ;;  %358 = vmatprep.mubr.f32.mxu0 %v899_v6 }
  0x30   : > { %406 = vmatprep.mubr.f32.mxu1 %v899_v6 }
  0x32   : > { %669 = vmatmul.mubr.msk.f32.gmra.mrb[12].mxu0 %vm202_vm3, %v188_v19 }
  0x33   : > { %677 = vmatmul.mubr.msk.f32.gmra.mrb[12].mxu1 %vm202_vm3, %v196_v20  ;;  %364 = vmatprep.mubr.f32.mxu0 %v899_v6 }
  0x34   : > { %412 = vmatprep.mubr.f32.mxu1 %v899_v6 }
  0x36   : > { %670 = vmatmul.mubr.msk.f32.gmra.mrb[14].mxu0 %vm202_vm3, %v189_v21 }
  0x37   : > { %678 = vmatmul.mubr.msk.f32.gmra.mrb[14].mxu1 %vm202_vm3, %v197_v22 }
  0xed   : > { %v324_v23 = vpop.f32.mrb[0].mxu0 }
  0xee   : > { %v372_v24 = vpop.f32.mrb[0].mxu1  ;;  %v419_v25 = vmin.f32 %v324_v23, 0.0  ;;  %v326_v27 = vpop.f32.mrb[1].mxu0 }
  0xef   : > { %v435_v26 = vmin.f32 %v372_v24, 0.0  ;;  %v374_v28 = vpop.f32.mrb[1].mxu1  ;;  %v420_v29 = vmin.f32 %v326_v27, 0.0 }
  0xf0   : > { %v436_v30 = vmin.f32 %v374_v28, 0.0  ;;  %v451_v31 = vmul.f32 1.442695, %v419_v25 }
  0xf1   : > { %v483_v32 = vmul.f32 1.442695, %v435_v26  ;;  %v453_v33 = vmul.f32 1.442695, %v420_v29  ;;  %v330_v35 = vpop.f32.mrb[2].mxu0 }
  0xf2   : > { %v485_v34 = vmul.f32 1.442695, %v436_v30  ;;  %v378_v36 = vpop.f32.mrb[2].mxu1  ;;  %754 = vpow2.f32 %v451_v31  ;;  %v421_v37 = vmin.f32 %v330_v35, 0.0  ;;  %v332_v39 = vpop.f32.mrb[3].mxu0 }
  0xf3   : > { %v437_v38 = vmin.f32 %v378_v36, 0.0  ;;  %v380_v40 = vpop.f32.mrb[3].mxu1  ;;  %756 = vpow2.f32 %v483_v32  ;;  %v422_v41 = vmin.f32 %v332_v39, 0.0 }
  0xf4   : > { %v438_v42 = vmin.f32 %v380_v40, 0.0  ;;  %758 = vpow2.f32 %v453_v33  ;;  %v455_v43 = vmul.f32 1.442695, %v421_v37 }
  0xf5   : > { %v487_v44 = vmul.f32 1.442695, %v437_v38  ;;  %760 = vpow2.f32 %v485_v34  ;;  %v457_v45 = vmul.f32 1.442695, %v422_v41  ;;  %v336_v47 = vpop.f32.mrb[4].mxu0 }
  0xf6   : > { %v489_v46 = vmul.f32 1.442695, %v438_v42  ;;  %v384_v48 = vpop.f32.mrb[4].mxu1  ;;  %762 = vpow2.f32 %v455_v43  ;;  %v423_v49 = vmin.f32 %v336_v47, 0.0  ;;  %v338_v51 = vpop.f32.mrb[5].mxu0 }
  0xf7   : > { %v439_v50 = vmin.f32 %v384_v48, 0.0  ;;  %v386_v52 = vpop.f32.mrb[5].mxu1  ;;  %764 = vpow2.f32 %v487_v44  ;;  %v424_v53 = vmin.f32 %v338_v51, 0.0 }
  0xf8   : > { %v440_v54 = vmin.f32 %v386_v52, 0.0  ;;  %766 = vpow2.f32 %v457_v45  ;;  %v459_v55 = vmul.f32 1.442695, %v423_v49 }
  0xf9   : > { %v491_v56 = vmul.f32 1.442695, %v439_v50  ;;  %768 = vpow2.f32 %v489_v46  ;;  %v461_v57 = vmul.f32 1.442695, %v424_v53  ;;  %v342_v59 = vpop.f32.mrb[6].mxu0 }
  0xfa   : > { %v493_v58 = vmul.f32 1.442695, %v440_v54  ;;  %v390_v60 = vpop.f32.mrb[6].mxu1  ;;  %770 = vpow2.f32 %v459_v55  ;;  %v425_v61 = vmin.f32 %v342_v59, 0.0  ;;  %v344_v63 = vpop.f32.mrb[7].mxu0 }
  0xfb   : > { %v441_v62 = vmin.f32 %v390_v60, 0.0  ;;  %v392_v0 = vpop.f32.mrb[7].mxu1  ;;  %772 = vpow2.f32 %v491_v56  ;;  %v426_v1 = vmin.f32 %v344_v63, 0.0 }
  0xfc   : > { %v442_v2 = vmin.f32 %v392_v0, 0.0  ;;  %v755_v3 = vpop.eup %754  ;;  %774 = vpow2.f32 %v461_v57  ;;  %v463_v4 = vmul.f32 1.442695, %v425_v61 }
  0xfd   : > { %v495_v5 = vmul.f32 1.442695, %v441_v62  ;;  %v757_v6 = vpop.eup %756  ;;  %515 = vst [vmem:[%s1026_s16] sm:$0xff] %v755_v3  ;;  %776 = vpow2.f32 %v493_v58  ;;  %v465_v7 = vmul.f32 1.442695, %v426_v1  ;;  %v348_v9 = vpop.f32.mrb[8].mxu0 }
  0xfe   : > { %v497_v8 = vmul.f32 1.442695, %v442_v2  ;;  %v396_v10 = vpop.f32.mrb[8].mxu1  ;;  %v759_v11 = vpop.eup %758  ;;  %531 = vst [vmem:[%s1026_s16 + $0x80] sm:$0xff] %v757_v6  ;;  %778 = vpow2.f32 %v463_v4  ;;  %v427_v12 = vmin.f32 %v348_v9, 0.0 }
  0xff   : > { %v443_v13 = vmin.f32 %v396_v10, 0.0  ;;  %v350_v14 = vpop.f32.mrb[9].mxu0  ;;  %v398_v15 = vpop.f32.mrb[9].mxu1  ;;  %516 = vst [vmem:[%s1026_s16 + $0x8] sm:$0xff] %v759_v11  ;;  %780 = vpow2.f32 %v495_v5 }
 0x100   : > { %v761_v16 = vpop.eup %760  ;;  %v428_v17 = vmin.f32 %v350_v14, 0.0  ;;  %v444_v18 = vmin.f32 %v398_v15, 0.0  ;;  %782 = vpow2.f32 %v465_v7  ;;  %v467_v20 = vmul.f32 1.442695, %v427_v12 }
 0x101   : > { %v763_v19 = vpop.eup %762  ;;  %532 = vst [vmem:[%s1026_s16 + $0x88] sm:$0xff] %v761_v16  ;;  %v499_v21 = vmul.f32 1.442695, %v443_v13  ;;  %784 = vpow2.f32 %v497_v8  ;;  %v354_v25 = vpop.f32.mrb[10].mxu0 }
 0x102   : > { %v765_v22 = vpop.eup %764  ;;  %517 = vst [vmem:[%s1026_s16 + $0x10] sm:$0xff] %v763_v19  ;;  %v469_v23 = vmul.f32 1.442695, %v428_v17  ;;  %v501_v24 = vmul.f32 1.442695, %v444_v18  ;;  %v402_v26 = vpop.f32.mrb[10].mxu1  ;;  %786 = vpow2.f32 %v467_v20 }
 0x103   : > { %v767_v27 = vpop.eup %766  ;;  %533 = vst [vmem:[%s1026_s16 + $0x90] sm:$0xff] %v765_v22  ;;  %v429_v28 = vmin.f32 %v354_v25, 0.0  ;;  %v445_v29 = vmin.f32 %v402_v26, 0.0  ;;  %v356_v30 = vpop.f32.mrb[11].mxu0  ;;  %788 = vpow2.f32 %v499_v21 }
 0x104   : > { %v404_v31 = vpop.f32.mrb[11].mxu1  ;;  %v769_v32 = vpop.eup %768  ;;  %518 = vst [vmem:[%s1026_s16 + $0x18] sm:$0xff] %v767_v27  ;;  %v430_v33 = vmin.f32 %v356_v30, 0.0  ;;  %790 = vpow2.f32 %v469_v23 }
 0x105   : > { %v446_v34 = vmin.f32 %v404_v31, 0.0  ;;  %v771_v35 = vpop.eup %770  ;;  %534 = vst [vmem:[%s1026_s16 + $0x98] sm:$0xff] %v769_v32  ;;  %v471_v36 = vmul.f32 1.442695, %v429_v28  ;;  %v503_v37 = vmul.f32 1.442695, %v445_v29  ;;  %792 = vpow2.f32 %v501_v24 }
 0x106   : > { %v773_v38 = vpop.eup %772  ;;  %519 = vst [vmem:[%s1026_s16 + $0x20] sm:$0xff] %v771_v35  ;;  %v473_v39 = vmul.f32 1.442695, %v430_v33  ;;  %v360_v41 = vpop.f32.mrb[12].mxu0 }
 0x107   : > { %v505_v40 = vmul.f32 1.442695, %v446_v34  ;;  %v408_v42 = vpop.f32.mrb[12].mxu1  ;;  %v775_v43 = vpop.eup %774  ;;  %535 = vst [vmem:[%s1026_s16 + $0xa0] sm:$0xff] %v773_v38  ;;  %794 = vpow2.f32 %v471_v36  ;;  %v431_v44 = vmin.f32 %v360_v41, 0.0 }
 0x108   : > { %v447_v45 = vmin.f32 %v408_v42, 0.0  ;;  %v362_v46 = vpop.f32.mrb[13].mxu0  ;;  %v410_v47 = vpop.f32.mrb[13].mxu1  ;;  %520 = vst [vmem:[%s1026_s16 + $0x28] sm:$0xff] %v775_v43  ;;  %796 = vpow2.f32 %v503_v37 }
 0x109   : > { %v777_v48 = vpop.eup %776  ;;  %v432_v49 = vmin.f32 %v362_v46, 0.0  ;;  %v448_v50 = vmin.f32 %v410_v47, 0.0  ;;  %798 = vpow2.f32 %v473_v39  ;;  %v475_v52 = vmul.f32 1.442695, %v431_v44  ;;  %v366_v57 = vpop.f32.mrb[14].mxu0 }
 0x10a   : > { %v779_v51 = vpop.eup %778  ;;  %536 = vst [vmem:[%s1026_s16 + $0xa8] sm:$0xff] %v777_v48  ;;  %v507_v53 = vmul.f32 1.442695, %v447_v45  ;;  %800 = vpow2.f32 %v505_v40  ;;  %v414_v58 = vpop.f32.mrb[14].mxu1  ;;  %v433_v60 = vmin.f32 %v366_v57, 0.0 }
 0x10b   : > { %v781_v54 = vpop.eup %780  ;;  %521 = vst [vmem:[%s1026_s16 + $0x30] sm:$0xff] %v779_v51  ;;  %v477_v55 = vmul.f32 1.442695, %v432_v49  ;;  %v509_v56 = vmul.f32 1.442695, %v448_v50  ;;  %802 = vpow2.f32 %v475_v52  ;;  %v449_v61 = vmin.f32 %v414_v58, 0.0 }
 0x10c   : > { %v783_v59 = vpop.eup %782  ;;  %537 = vst [vmem:[%s1026_s16 + $0xb0] sm:$0xff] %v781_v54  ;;  %v368_v62 = vpop.f32.mrb[15].mxu0  ;;  %804 = vpow2.f32 %v507_v53  ;;  %v479_v4 = vmul.f32 1.442695, %v433_v60 }
 0x10d   : > { %v416_v63 = vpop.f32.mrb[15].mxu1  ;;  %v785_v0 = vpop.eup %784  ;;  %522 = vst [vmem:[%s1026_s16 + $0x38] sm:$0xff] %v783_v59  ;;  %v434_v1 = vmin.f32 %v368_v62, 0.0  ;;  %806 = vpow2.f32 %v477_v55  ;;  %v511_v5 = vmul.f32 1.442695, %v449_v61 }
 0x10e   : > { %v450_v2 = vmin.f32 %v416_v63, 0.0  ;;  %v787_v3 = vpop.eup %786  ;;  %538 = vst [vmem:[%s1026_s16 + $0xb8] sm:$0xff] %v785_v0  ;;  %808 = vpow2.f32 %v509_v56 }
 0x10f   : > { %v789_v6 = vpop.eup %788  ;;  %523 = vst [vmem:[%s1026_s16 + $0x40] sm:$0xff] %v787_v3  ;;  %v481_v7 = vmul.f32 1.442695, %v434_v1  ;;  %810 = vpow2.f32 %v479_v4 }
 0x110   : > { %v513_v8 = vmul.f32 1.442695, %v450_v2  ;;  %v791_v9 = vpop.eup %790  ;;  %539 = vst [vmem:[%s1026_s16 + $0xc0] sm:$0xff] %v789_v6  ;;  %812 = vpow2.f32 %v511_v5 }
 0x111   : > { %v793_v10 = vpop.eup %792  ;;  %524 = vst [vmem:[%s1026_s16 + $0x48] sm:$0xff] %v791_v9  ;;  %814 = vpow2.f32 %v481_v7 }
 0x112   : > { %v795_v11 = vpop.eup %794  ;;  %540 = vst [vmem:[%s1026_s16 + $0xc8] sm:$0xff] %v793_v10  ;;  %816 = vpow2.f32 %v513_v8 }
 0x113   : > { %v797_v12 = vpop.eup %796  ;;  %525 = vst [vmem:[%s1026_s16 + $0x50] sm:$0xff] %v795_v11 }
 0x114   : > { %v799_v13 = vpop.eup %798  ;;  %541 = vst [vmem:[%s1026_s16 + $0xd0] sm:$0xff] %v797_v12 }
 0x115   : > { %v801_v14 = vpop.eup %800  ;;  %526 = vst [vmem:[%s1026_s16 + $0x58] sm:$0xff] %v799_v13 }
 0x116   : > { %v803_v15 = vpop.eup %802  ;;  %542 = vst [vmem:[%s1026_s16 + $0xd8] sm:$0xff] %v801_v14 }
 0x117   : > { %v805_v16 = vpop.eup %804  ;;  %527 = vst [vmem:[%s1026_s16 + $0x60] sm:$0xff] %v803_v15 }
 0x118   : > { %v807_v17 = vpop.eup %806  ;;  %543 = vst [vmem:[%s1026_s16 + $0xe0] sm:$0xff] %v805_v16 }
 0x119   : > { %v809_v18 = vpop.eup %808  ;;  %528 = vst [vmem:[%s1026_s16 + $0x68] sm:$0xff] %v807_v17 }
 0x11a   : > { %v811_v19 = vpop.eup %810  ;;  %544 = vst [vmem:[%s1026_s16 + $0xe8] sm:$0xff] %v809_v18 }
 0x11b   : > { %v813_v20 = vpop.eup %812  ;;  %529 = vst [vmem:[%s1026_s16 + $0x70] sm:$0xff] %v811_v19 }
 0x11c   : > { %v815_v21 = vpop.eup %814  ;;  %545 = vst [vmem:[%s1026_s16 + $0xf0] sm:$0xff] %v813_v20 }
 0x11d   : > { %v817_v22 = vpop.eup %816  ;;  %530 = vst [vmem:[%s1026_s16 + $0x78] sm:$0xff] %v815_v21 }
 0x11e   : > { %546 = vst [vmem:[%s1026_s16 + $0xf8] sm:$0xff] %v817_v22 }
 0x11f   : > { %831 = shalt.err (!%p828_p5)
}
 0x120   : > { %s832_s30 = scalar_lea.hbm %s1062_s25, 4096  ;;  %s836_s5 = scalar_lea.hbm %s1119_s2, 8192 }
 0x121   : > { %p833_p6 = scmp.ne.s32.totalorder %s1062_s25, %s832_s30  ;;  %p837_p10 = scmp.lt.u32.totalorder %s1062_s25, %s1119_s2 }
 0x122   : > { %p838_p11 = scmp.lt.u32.totalorder %s836_s5, %s832_s30  ;;  %p840_p13 = scmp.lt.u32.totalorder %s832_s30, %s1062_s25 }
 0x123   : > { %p834_p7 = pnand %p833_p6, %p958_p4 }
 0x124   : > { %p839_p12 = por %p838_p11, %p837_p10 }
 0x125   : > { %p835_p9 = pneg %p834_p7 }
 0x126   : > { %p841_p0 = por %p840_p13, %p839_p12 }
 0x128   : > { %p842_p1 = pnand %p841_p0, %p835_p9 }
 0x12a   : > { %845 = shalt.err (!%p842_p1)
}
 0x12b   : > { %s901_s8 = smov 256   ;;  %s902_s15 = smov 16  }
 0x12c   : > { %695 = dma.vmem_to_hbm [thread:$0]  (%p958_p4), %s1064_s20, 4096, %s1062_s25, %s1071_s12, %s901_s8, %s901_s8, %s902_s15  }
 0x12d PF: > { %p701_p2 = scmp.ge.s32.totalorder %s896_s14, 2  ;;  %s579_s16 = sand.u32 1, %s876_s9  }
 0x12e   : > { %s580_s18 = scalar_lea.sflag [#allocation3], %s579_s16 }
 0x12f   : > { %p698_p3 = pnand %p701_p2, %p965_p8 }
 0x131   : > { %871 = dma.done.wait (!%p698_p3), %s580_s18, 4096  }
 0x132   : > { %873 = vsyncadd (!%p698_p3), %s580_s18, 4294963200  ;;  %s15_s14 = sadd.s32 1, %s896_s14   ;;  %s1122_s9 = smov %s880_s10 }
 0x133   : > { %p12_p5 = scmp.ge.s32.totalorder %s15_s14, 4   ;;  %s1123_s10 = smov %s884_s11 }
 0x134   : > { %s1124_s11 = smov %s971_s22  ;;  %s1125_s12 = smov %s892_s13 }
 0x135   : > { %s1126_s13 = smov %s1128_s17  ;;  %14 = sbr.rel (!%p12_p5) target bundleno = 4 (0x4), region = 66 }
 0x13c   :  { %585 = vsyncpa [#allocation3], 1 }
 0x13d   :  { %587 = vsyncpa [#allocation3 + $0x1], 1 }

</bundles_post_ra>
